<compile_context>
chip_gen: v7x
topology: tpu7x:2x2x1
jax: 0.10.0
libtpu: 0.0.40
codegen_flags: <defaults>
</compile_context>

<pallas_src>
import math

import jax
import jax.numpy as jnp
from jax.experimental import pallas as pl
from jax.experimental.pallas import tpu as pltpu


def _round_up(x: int, m: int) -> int:
    return ((x + m - 1) // m) * m


# ---------------------------------------------------------------------------
# Kernel
# ---------------------------------------------------------------------------
def time_embedding_kernel(t_ref, freq_ref, phase_ref, w1_ref, b1_ref,
                          w2_ref, b2_ref, out_ref, h_ref):
    # t_ref:     (TB, 1)    f32   timestep tile (batch tile i)
    # freq_ref:  (1, Kp)    f32   [freq | freq | 0-pad]
    # phase_ref: (1, Kp)    f32   [0    | pi/2 | 0-pad]
    # w1_ref:    (Kp, Cp)         lin1.weight.T, zero-padded
    # b1_ref:    (1, Cp)    f32
    # w2_ref:    (Cp, TN)         lin2.weight.T column tile j, zero-padded
    # b2_ref:    (1, TN)    f32
    # out_ref:   (TB, TN)   f32
    # h_ref:     (TB, Cp)   f32   VMEM scratch: Swish(lin1(.)), reused over j
    j = pl.program_id(1)

    @pl.when(j == 0)
    def _():
        t = t_ref[...]
        # phase trick: concat(sin(x), cos(x)) == sin([x, x] + [0, pi/2])
        emb = jnp.sin(t * freq_ref[...] + phase_ref[...])           # (TB, Kp)
        w1 = w1_ref[...].astype(jnp.float32)
        h = jnp.dot(emb, w1, preferred_element_type=jnp.float32) + b1_ref[...]
        h_ref[...] = h * jax.nn.sigmoid(h)                          # Swish (EUP)

    w2 = w2_ref[...].astype(jnp.float32)
    out = jnp.dot(h_ref[...], w2, preferred_element_type=jnp.float32) + b2_ref[...]
    out_ref[...] = out.astype(out_ref.dtype)


# ---------------------------------------------------------------------------
# Parameters
# ---------------------------------------------------------------------------
def init_params(key, n_channels):
    """Deterministic init matching nn.Linear shapes (PyTorch (out, in) layout)."""
    in1 = n_channels // 4
    k1, k2, k3, k4 = jax.random.split(key, 4)
    bound1 = 1.0 / math.sqrt(in1)
    bound2 = 1.0 / math.sqrt(n_channels)
    return {
        "w1": jax.random.uniform(k1, (n_channels, in1), jnp.float32, -bound1, bound1),
        "b1": jax.random.uniform(k2, (n_channels,), jnp.float32, -bound1, bound1),
        "w2": jax.random.uniform(k3, (n_channels, n_channels), jnp.float32, -bound2, bound2),
        "b2": jax.random.uniform(k4, (n_channels,), jnp.float32, -bound2, bound2),
    }


def prepare_time_embedding_params(params, n_channels, weight_dtype=jnp.float32):
    """One-time prep: transpose/pad/cast weights and build the freq/phase table.

    Call once at model init; the per-call forward then does no weight
    reshuffling (no per-forward transposes / concats / HBM copies).
    """
    half_dim = n_channels // 8
    assert half_dim >= 2, "n_channels must be >= 16 (log-scale divides by half_dim - 1)"
    C = n_channels
    K = 2 * half_dim                 # == n_channels // 4 == lin1 in_features
    Kp = _round_up(K, 128)           # lane-dense contraction dim
    Cp = _round_up(C, 128)           # lane-dense feature dim

    scale = math.log(10000.0) / (half_dim - 1)
    freq = jnp.exp(jnp.arange(half_dim, dtype=jnp.float32) * -scale)
    freq2 = jnp.zeros((1, Kp), jnp.float32).at[0, :K].set(jnp.concatenate([freq, freq]))
    phase = jnp.zeros((1, Kp), jnp.float32).at[0, half_dim:K].set(jnp.pi / 2)

    def pad2(x, rows, cols):
        return jnp.pad(x, ((0, rows - x.shape[0]), (0, cols - x.shape[1])))

    w1p = pad2(params["w1"].T, Kp, Cp).astype(weight_dtype)      # (Kp, Cp)
    w2p = pad2(params["w2"].T, Cp, Cp).astype(weight_dtype)      # (Cp, Cp)
    b1p = jnp.pad(params["b1"], (0, Cp - C)).reshape(1, Cp).astype(jnp.float32)
    b2p = jnp.pad(params["b2"], (0, Cp - C)).reshape(1, Cp).astype(jnp.float32)

    return {
        "n_channels": C, "Kp": Kp, "Cp": Cp,
        "freq": freq2, "phase": phase,
        "w1": w1p, "b1": b1p, "w2": w2p, "b2": b2p,
    }


# ---------------------------------------------------------------------------
# Forward
# ---------------------------------------------------------------------------
def time_embedding(t, prepared, *, max_batch_tile=256, max_feat_tile=512):
    """Forward pass. t: (B,) -> (B, n_channels)."""
    B = t.shape[0]
    C, Kp, Cp = prepared["n_channels"], prepared["Kp"], prepared["Cp"]

    # Batch tile: multiple of 8 (f32 sublane), capped so activation VMEM stays small.
    TB = min(_round_up(B, 8), max_batch_tile)
    Bp = _round_up(B, TB)
    t2 = jnp.pad(t.astype(jnp.float32).reshape(B, 1), ((0, Bp - B), (0, 0)))

    # lin2 output-feature tile: largest multiple of 128 <= max_feat_tile dividing Cp.
    TN = min(Cp, _round_up(max_feat_tile, 128))
    while Cp % TN != 0:
        TN -= 128

    resident = lambda i, j: (0, 0)   # constant block index -> stays VMEM-resident
    out = pl.pallas_call(
        time_embedding_kernel,
        out_shape=jax.ShapeDtypeStruct((Bp, Cp), jnp.float32),
        grid=(Bp // TB, Cp // TN),
        in_specs=[
            pl.BlockSpec((TB, 1), lambda i, j: (i, 0)),    # t tile
            pl.BlockSpec((1, Kp), resident),               # freq
            pl.BlockSpec((1, Kp), resident),               # phase
            pl.BlockSpec((Kp, Cp), resident),              # w1
            pl.BlockSpec((1, Cp), resident),               # b1
            pl.BlockSpec((Cp, TN), lambda i, j: (0, j)),   # w2 column tile
            pl.BlockSpec((1, TN), lambda i, j: (0, j)),    # b2 column tile
        ],
        out_specs=pl.BlockSpec((TB, TN), lambda i, j: (i, j)),
        scratch_shapes=[pltpu.VMEM((TB, Cp), jnp.float32)],   # Swish(lin1) per batch tile
        compiler_params=pltpu.CompilerParams(
            # batch tiles independent (megacore on v7x); feature tiles must run
            # sequentially per batch tile because they reuse the h scratch.
            dimension_semantics=("parallel", "arbitrary")),
    )(t2, prepared["freq"], prepared["phase"], prepared["w1"], prepared["b1"],
      prepared["w2"], prepared["b2"])
    # TODO(synk): for extremely large n_channels (Cp >= ~8192) also tile w1 /
    # h over the hidden axis (third grid axis + accumulator) so the (Kp, Cp)
    # lin1 weight and the h scratch fit v7x's 64 MiB VMEM.
    return out[:B, :C]


# ---------------------------------------------------------------------------
# Pure-JAX reference (mirrors the PyTorch forward)
# ---------------------------------------------------------------------------
def time_embedding_ref(t, params, n_channels):
    half_dim = n_channels // 8
    scale = math.log(10000.0) / (half_dim - 1)
    freq = jnp.exp(jnp.arange(half_dim, dtype=jnp.float32) * -scale)
    emb = t[:, None].astype(jnp.float32) * freq[None, :]
    emb = jnp.concatenate([jnp.sin(emb), jnp.cos(emb)], axis=1)
    hp = jax.lax.Precision.HIGHEST
    h = jnp.dot(emb, params["w1"].T, precision=hp) + params["b1"]
    h = h * jax.nn.sigmoid(h)
    return jnp.dot(h, params["w2"].T, precision=hp) + params["b2"]


if __name__ == "__main__":
    n_channels = 32    # -> half_dim = 4, lin1: 8 -> 32, lin2: 32 -> 32
    batch = 8

    key = jax.random.PRNGKey(0)
    kp, kt = jax.random.split(key)
    params = init_params(kp, n_channels)
    t = jax.random.uniform(kt, (batch,), jnp.float32, 0.0, 1000.0)

    # One-time prep (transpose / pad / freq table) -- not per-call.
    prepared = prepare_time_embedding_params(params, n_channels)

    out = jax.block_until_ready(time_embedding(t, prepared))

    ref = time_embedding_ref(t, params, n_channels)

    assert out.shape == (batch, n_channels)
    assert jnp.allclose(out, ref, atol=5e-3, rtol=5e-3), "mismatch vs reference"

    print("KERNEL_OK")
</pallas_src>

<mosaic_0001>
module attributes {stable_mosaic.version = 11 : i64} {
  func.func @time_embedding_kernel(%arg0: i32, %arg1: i32, %arg2: memref<8x1xf32, #tpu.memory_space<vmem>>, %arg3: memref<1x128xf32, #tpu.memory_space<vmem>>, %arg4: memref<1x128xf32, #tpu.memory_space<vmem>>, %arg5: memref<128x128xf32, #tpu.memory_space<vmem>>, %arg6: memref<1x128xf32, #tpu.memory_space<vmem>>, %arg7: memref<128x128xf32, #tpu.memory_space<vmem>>, %arg8: memref<1x128xf32, #tpu.memory_space<vmem>>, %arg9: memref<8x128xf32, #tpu.memory_space<vmem>>, %arg10: memref<8x128xf32, #tpu.memory_space<vmem>>) attributes {dimension_semantics = [#tpu.dimension_semantics<parallel>, #tpu.dimension_semantics<arbitrary>], iteration_bounds = array<i64: 1, 1>, scalar_prefetch = 0 : i64, scratch_operands = 1 : i64, tpu.core_type = #tpu.core_type<tc>, window_params = [{transform_indices = @transform_0, window_bounds = array<i64: 8, 1>}, {pipeline_mode = #tpu.pipeline_mode<synchronous>, transform_indices = @transform_1, window_bounds = array<i64: 1, 128>}, {pipeline_mode = #tpu.pipeline_mode<synchronous>, transform_indices = @transform_2, window_bounds = array<i64: 1, 128>}, {pipeline_mode = #tpu.pipeline_mode<synchronous>, transform_indices = @transform_3, window_bounds = array<i64: 128, 128>}, {pipeline_mode = #tpu.pipeline_mode<synchronous>, transform_indices = @transform_4, window_bounds = array<i64: 1, 128>}, {transform_indices = @transform_5, window_bounds = array<i64: 128, 128>}, {transform_indices = @transform_6, window_bounds = array<i64: 1, 128>}, {transform_indices = @transform_7, window_bounds = array<i64: 8, 128>}]} {
    %c0_i32 = arith.constant 0 : i32
    %0 = arith.cmpi eq, %arg1, %c0_i32 : i32
    %1 = arith.extui %0 : i1 to i32
    %c0_i32_0 = arith.constant 0 : i32
    %2 = arith.cmpi ne, %1, %c0_i32_0 : i32
    scf.if %2 {
      %c0_8 = arith.constant 0 : index
      %c0_9 = arith.constant 0 : index
      %10 = vector.load %arg2[%c0_8, %c0_9] : memref<8x1xf32, #tpu.memory_space<vmem>>, vector<8x1xf32>
      %c0_10 = arith.constant 0 : index
      %c0_11 = arith.constant 0 : index
      %11 = vector.load %arg3[%c0_10, %c0_11] : memref<1x128xf32, #tpu.memory_space<vmem>>, vector<1x128xf32>
      %12 = vector.broadcast %10 : vector<8x1xf32> to vector<8x128xf32>
      %13 = vector.broadcast %11 : vector<1x128xf32> to vector<8x128xf32>
      %14 = arith.mulf %12, %13 : vector<8x128xf32>
      %c0_12 = arith.constant 0 : index
      %c0_13 = arith.constant 0 : index
      %15 = vector.load %arg4[%c0_12, %c0_13] : memref<1x128xf32, #tpu.memory_space<vmem>>, vector<1x128xf32>
      %16 = vector.broadcast %15 : vector<1x128xf32> to vector<8x128xf32>
      %17 = arith.addf %14, %16 : vector<8x128xf32>
      %18 = math.sin %17 : vector<8x128xf32>
      %c0_14 = arith.constant 0 : index
      %c0_15 = arith.constant 0 : index
      %19 = vector.load %arg5[%c0_14, %c0_15] : memref<128x128xf32, #tpu.memory_space<vmem>>, vector<128x128xf32>
      %cst_16 = arith.constant dense<0.000000e+00> : vector<8x128xf32>
      %20 = tpu.matmul %18, %19, %cst_16 {dimension_numbers = #tpu.dot_dimension_numbers<[1], [0], [0], [1], [0, 0, 1, 1], [], []>} : vector<8x128xf32>, vector<128x128xf32>, vector<8x128xf32> -> vector<8x128xf32>
      %c0_17 = arith.constant 0 : index
      %c0_18 = arith.constant 0 : index
      %21 = vector.load %arg6[%c0_17, %c0_18] : memref<1x128xf32, #tpu.memory_space<vmem>>, vector<1x128xf32>
      %22 = vector.broadcast %21 : vector<1x128xf32> to vector<8x128xf32>
      %23 = arith.addf %20, %22 : vector<8x128xf32>
      %24 = arith.negf %23 : vector<8x128xf32>
      %25 = math.exp %24 : vector<8x128xf32>
      %cst_19 = arith.constant 1.000000e+00 : f32
      %26 = vector.broadcast %cst_19 : f32 to vector<8x128xf32>
      %27 = arith.addf %26, %25 : vector<8x128xf32>
      %28 = arith.divf %26, %27 : vector<8x128xf32>
      %29 = arith.mulf %23, %28 : vector<8x128xf32>
      %c0_20 = arith.constant 0 : index
      %c0_21 = arith.constant 0 : index
      %30 = vector.load %arg10[%c0_20, %c0_21] : memref<8x128xf32, #tpu.memory_space<vmem>>, vector<8x128xf32>
      tpu.vector_store %arg10[%c0_20, %c0_21], %29 {strides = array<i32>} : memref<8x128xf32, #tpu.memory_space<vmem>>, vector<8x128xf32>,
    } else {
    }
    %c0 = arith.constant 0 : index
    %c0_1 = arith.constant 0 : index
    %3 = vector.load %arg7[%c0, %c0_1] : memref<128x128xf32, #tpu.memory_space<vmem>>, vector<128x128xf32>
    %c0_2 = arith.constant 0 : index
    %c0_3 = arith.constant 0 : index
    %4 = vector.load %arg10[%c0_2, %c0_3] : memref<8x128xf32, #tpu.memory_space<vmem>>, vector<8x128xf32>
    %cst = arith.constant dense<0.000000e+00> : vector<8x128xf32>
    %5 = tpu.matmul %4, %3, %cst {dimension_numbers = #tpu.dot_dimension_numbers<[1], [0], [0], [1], [0, 0, 1, 1], [], []>} : vector<8x128xf32>, vector<128x128xf32>, vector<8x128xf32> -> vector<8x128xf32>
    %c0_4 = arith.constant 0 : index
    %c0_5 = arith.constant 0 : index
    %6 = vector.load %arg8[%c0_4, %c0_5] : memref<1x128xf32, #tpu.memory_space<vmem>>, vector<1x128xf32>
    %7 = vector.broadcast %6 : vector<1x128xf32> to vector<8x128xf32>
    %8 = arith.addf %5, %7 : vector<8x128xf32>
    %c0_6 = arith.constant 0 : index
    %c0_7 = arith.constant 0 : index
    %9 = vector.load %arg9[%c0_6, %c0_7] : memref<8x128xf32, #tpu.memory_space<vmem>>, vector<8x128xf32>
    tpu.vector_store %arg9[%c0_6, %c0_7], %8 {strides = array<i32>} : memref<8x128xf32, #tpu.memory_space<vmem>>, vector<8x128xf32>,
    return
  }
  func.func @transform_0(%arg0: i32, %arg1: i32) -> (i32, i32) {
    %c0_i32 = arith.constant 0 : i32
    %c0_i32_0 = arith.constant 0 : i32
    return %arg0, %c0_i32 : i32, i32
  }
  func.func @transform_1(%arg0: i32, %arg1: i32) -> (i32, i32) {
    %c0_i32 = arith.constant 0 : i32
    %c0_i32_0 = arith.constant 0 : i32
    %c0_i32_1 = arith.constant 0 : i32
    return %c0_i32, %c0_i32_0 : i32, i32
  }
  func.func @transform_2(%arg0: i32, %arg1: i32) -> (i32, i32) {
    %c0_i32 = arith.constant 0 : i32
    %c0_i32_0 = arith.constant 0 : i32
    %c0_i32_1 = arith.constant 0 : i32
    return %c0_i32, %c0_i32_0 : i32, i32
  }
  func.func @transform_3(%arg0: i32, %arg1: i32) -> (i32, i32) {
    %c0_i32 = arith.constant 0 : i32
    %c0_i32_0 = arith.constant 0 : i32
    %c0_i32_1 = arith.constant 0 : i32
    return %c0_i32, %c0_i32_0 : i32, i32
  }
  func.func @transform_4(%arg0: i32, %arg1: i32) -> (i32, i32) {
    %c0_i32 = arith.constant 0 : i32
    %c0_i32_0 = arith.constant 0 : i32
    %c0_i32_1 = arith.constant 0 : i32
    return %c0_i32, %c0_i32_0 : i32, i32
  }
  func.func @transform_5(%arg0: i32, %arg1: i32) -> (i32, i32) {
    %c0_i32 = arith.constant 0 : i32
    %c0_i32_0 = arith.constant 0 : i32
    return %c0_i32, %arg1 : i32, i32
  }
  func.func @transform_6(%arg0: i32, %arg1: i32) -> (i32, i32) {
    %c0_i32 = arith.constant 0 : i32
    %c0_i32_0 = arith.constant 0 : i32
    return %c0_i32, %arg1 : i32, i32
  }
  func.func @transform_7(%arg0: i32, %arg1: i32) -> (i32, i32) {
    %c0_i32 = arith.constant 0 : i32
    return %arg0, %arg1 : i32, i32
  }
}

</mosaic_0001>

<bundles_post_ra>
// kernel: tpu_custom_call.1
= control target key start
LH: loop header
LB: loop body
LE: loop exit
PB: predicated region body
PF: predicated region fallthrough
CT: control target
= control target key end

     0   :  { %12 = vsyncpa [#allocation4], 0  ;;  %s801_s0 = inlined_call_operand.vmem [shape: f32[8,1], index: 0, kind: input, shape index: {}]   ;;  %s802_s1 = inlined_call_operand.vmem [shape: f32[1,128], index: 1, kind: input, shape index: {}]   ;;  %s803_s2 = inlined_call_operand.vmem [shape: f32[1,128], index: 2, kind: input, shape index: {}]   ;;  %s804_s3 = inlined_call_operand.hbm [shape: f32[128,128], index: 3, kind: input, shape index: {}]   ;;  %s805_s4 = inlined_call_operand.vmem [shape: f32[1,128], index: 4, kind: input, shape index: {}]   ;;  %s806_s5 = inlined_call_operand.hbm [shape: f32[128,128], index: 5, kind: input, shape index: {}]   ;;  %s807_s6 = inlined_call_operand.vmem [shape: f32[1,128], index: 6, kind: input, shape index: {}]   ;;  %s808_s7 = inlined_call_operand.hbm [shape: f32[8,128], index: 7, kind: output, shape index: {}]  }
   0x1   :  { %13 = vsyncpa [#allocation7], 0 }
   0x2   :  { %14 = vsyncpa [#allocation5], 0  ;;  %s658_s24 = smov [#allocation3]   ;;  %s586_s28 = scalar_lea.hbm %s804_s3, 2048 }
   0x3   :  { %s26_s25 = sshll.u32 %s658_s24, 4  ;;  %p587_p0 = scmp.ne.s32.totalorder %s804_s3, %s586_s28  ;;  %s27_s25 = int_to_ptr.vmem [resolvable:$true] %s26_s25 }
   0x4   :  { %p590_p1 = scmp.lt.u32.totalorder %s586_s28, %s804_s3 }
   0x6   :  { %p592_p2 = pnand %p590_p1, %p587_p0 }
   0x8   :  { %595 = shalt.err (!%p592_p2)
}
   0x9   :  { %s596_s10 = scalar_lea.vmem %s27_s25, 2048  ;;  %p601_p4 = scmp.lt.s32.totalorder %s27_s25, %s27_s25 }
   0xa   :  { %p597_p3 = scmp.ne.s32.totalorder %s27_s25, %s596_s10  ;;  %p602_p5 = scmp.lt.s32.totalorder %s596_s10, %s596_s10 }
   0xc   :  { %p603_p6 = por %p602_p5, %p601_p4 }
   0xe   :  { %p604_p7 = pnand %p603_p6, %p597_p3 }
  0x10   :  { %607 = shalt.err (!%p604_p7)
}
  0x11   :  { %s659_s11 = smov 128   ;;  %s660_s12 = smov 8  }
  0x12   :  { %32 = dma.hbm_to_vmem [thread:$0]  %s804_s3, 2048, %s27_s25, [#allocation4], %s659_s11, %s659_s11, %s660_s12  }
  0x13   :  { %s661_s15 = smov [#allocation6]   ;;  %s608_s19 = scalar_lea.hbm %s806_s5, 2048 }
  0x14   :  { %s40_s16 = sshll.u32 %s661_s15, 4  ;;  %p609_p8 = scmp.ne.s32.totalorder %s806_s5, %s608_s19  ;;  %s41_s16 = int_to_ptr.vmem [resolvable:$true] %s40_s16 }
  0x15   :  { %p612_p9 = scmp.lt.u32.totalorder %s608_s19, %s806_s5 }
  0x17   :  { %p614_p10 = pnand %p612_p9, %p609_p8 }
  0x19   :  { %617 = shalt.err (!%p614_p10)
}
  0x1a   :  { %s618_s24 = scalar_lea.vmem %s41_s16, 2048  ;;  %p623_p12 = scmp.lt.s32.totalorder %s41_s16, %s41_s16 }
  0x1b   :  { %p619_p11 = scmp.ne.s32.totalorder %s41_s16, %s618_s24  ;;  %p624_p13 = scmp.lt.s32.totalorder %s618_s24, %s618_s24 }
  0x1d   :  { %p625_p0 = por %p624_p13, %p623_p12 }
  0x1f   :  { %p626_p1 = pnand %p625_p0, %p619_p11 }
  0x21   :  { %629 = shalt.err (!%p626_p1)
}
  0x22   :  { %46 = dma.hbm_to_vmem [thread:$0]  %s806_s5, 2048, %s41_s16, [#allocation7], %s659_s11, %s659_s11, %s660_s12  }
  0x23   :  { %652 = dma.done.wait [#allocation4], 2048  }
  0x24   :  { %653 = vsyncadd [#allocation4], 4294965248 }
  0x25   :  { %654 = dma.done.wait [#allocation7], 2048  }
  0x26   :  { %655 = vsyncadd [#allocation7], 4294965248  ;;  %v662_v0 = vmov 0   ;;  %v59_v1 = vld [vmem:[%s801_s0] sm:$0xff]  ;;  %v186_v3 = vld [vmem:[#allocation3 + $0x8] sm:$0xff]  ;;  %v663_v5 = vmov 0.0|0.0  }
  0x27   :  { %577 = vset.pattern.permute.xlu0 %v662_v0  ;;  %v185_v2 = vld [vmem:[#allocation3] sm:$0xff]  ;;  %v187_v4 = vld [vmem:[#allocation3 + $0x10] sm:$0xff]  ;;  %510 = vmatprep.subr.bf16.mxu0 %v663_v5  ;;  %v188_v7 = vld [vmem:[#allocation3 + $0x18] sm:$0xff]  ;;  %vm664_vm0 = vmmov 0   ;;  %v665_v8 = vmov 0.0   ;;  %s672_s9 = smov [#allocation8]  }
  0x28   :  { %63 = vperm.xlu0 %577, %v59_v1   ;;  %v511_v6 = vpack.c.bf16 %v186_v3, %v185_v2  ;;  %472 = vmatprep.mubr.msk.f32.mxu0 %vm664_vm0, %v665_v8  ;;  %v514_v9 = vpack.c.bf16 %v188_v7, %v187_v4  ;;  %v189_v10 = vld [vmem:[#allocation3 + $0x20] sm:$0xff]  ;;  %v190_v11 = vld [vmem:[#allocation3 + $0x28] sm:$0xff]  ;;  %v191_v13 = vld [vmem:[#allocation3 + $0x30] sm:$0xff]  ;;  %v666_v44 = vmov 2102212464   ;;  %s387_s10 = sshll.u32 %s672_s9, 4  ;;  %s388_s10 = int_to_ptr.vmem [resolvable:$true] %s387_s10 }
  0x29   :  { %534 = vmatprep.subr.bf16.mxu1 %v663_v5  ;;  %507 = vmatprep.mubr.msk.f32.mxu1 %vm664_vm0, %v665_v8  ;;  %v517_v12 = vpack.c.bf16 %v190_v11, %v189_v10  ;;  %v192_v14 = vld [vmem:[#allocation3 + $0x38] sm:$0xff]  ;;  %v193_v16 = vld [vmem:[#allocation3 + $0x40] sm:$0xff]  ;;  %v194_v17 = vld [vmem:[#allocation3 + $0x48] sm:$0xff]  ;;  %v667_v46 = vmov 920167782   ;;  %p635_p3 = scmp.lt.s32.totalorder %s388_s10, %s388_s10 }
  0x2a   :  { %512 = vmatpush3.bf16.msra.mxu0 %v511_v6  ;;  %v520_v15 = vpack.c.bf16 %v192_v14, %v191_v13  ;;  %v523_v18 = vpack.c.bf16 %v194_v17, %v193_v16  ;;  %v195_v19 = vld [vmem:[#allocation3 + $0x50] sm:$0xff]  ;;  %v196_v20 = vld [vmem:[#allocation3 + $0x58] sm:$0xff]  ;;  %v197_v22 = vld [vmem:[#allocation3 + $0x60] sm:$0xff]  ;;  %v668_v50 = vmov 1326507024  }
  0x2b   :  { %513 = vmatprep.subr.bf16.mxu0 %v663_v5  ;;  %v526_v21 = vpack.c.bf16 %v196_v20, %v195_v19  ;;  %v198_v23 = vld [vmem:[#allocation3 + $0x68] sm:$0xff]  ;;  %v199_v25 = vld [vmem:[#allocation3 + $0x70] sm:$0xff]  ;;  %v200_v26 = vld [vmem:[#allocation3 + $0x78] sm:$0xff]  ;;  %v669_v52 = vmov 683565275  }
  0x2c   :  { %v529_v24 = vpack.c.bf16 %v198_v23, %v197_v22  ;;  %v532_v27 = vpack.c.bf16 %v200_v26, %v199_v25  ;;  %v397_v28 = vld [vmem:[%s802_s1] ss:$0 sm:$0xff]  ;;  %v670_v54 = vmov 2475754826   ;;  %v671_v57 = vmov 2131351028  }
  0x2d   :  { %v398_v29 = vld [vmem:[%s803_s2] ss:$0 sm:$0xff] }
  0x2e   :  { %515 = vmatpush3.bf16.msra.mxu0 %v514_v9 }
  0x2f   :  { %516 = vmatprep.subr.bf16.mxu0 %v663_v5 }
  0x32   :  { %518 = vmatpush3.bf16.msra.mxu0 %v517_v12 }
  0x33   :  { %519 = vmatprep.subr.bf16.mxu0 %v663_v5 }
  0x36   :  { %521 = vmatpush3.bf16.msra.mxu0 %v520_v15 }
  0x37   :  { %522 = vmatprep.subr.bf16.mxu0 %v663_v5 }
  0x3a   :  { %524 = vmatpush3.bf16.msra.mxu0 %v523_v18 }
  0x3b   :  { %525 = vmatprep.subr.bf16.mxu0 %v663_v5 }
  0x3e   :  { %527 = vmatpush3.bf16.msra.mxu0 %v526_v21 }
  0x3f   :  { %528 = vmatprep.subr.bf16.mxu0 %v663_v5 }
  0x42   :  { %530 = vmatpush3.bf16.msra.mxu0 %v529_v24 }
  0x43   :  { %531 = vmatprep.subr.bf16.mxu0 %v663_v5 }
  0x46   :  { %533 = vmatpush3.bf16.msra.mxu0 %v532_v27 }
  0xa7   :  { %v64_v30 = vpop.permute.xlu0 %63 }
  0xa8   :  { %v72_v31 = vmul.f32 %v397_v28, %v64_v30 }
  0xaa   :  { %v755_v32 = vadd.f32 %v398_v29, %v72_v31 }
  0xac   :  { %v84_v33 = vand.u32 2139095040, %v755_v32  ;;  %v81_v34 = vand.u32 2147483647, %v755_v32  ;;  %vm83_vm8 = vcmp.lt.s32.totalorder %v755_v32, 0  ;;  %vm173_vm13 = vweird.f32 %v755_v32 }
  0xae   :  { %v85_v35 = vshrl.u32 %v84_v33, 23  ;;  %v88_v37 = vand.u32 8388607, %v81_v34  ;;  %vm82_vm9 = vcmp.le.f32.partialorder %v81_v34, 0.7853982 }
  0xb0   :  { %v399_v36 = vadd.s32 4294967169, %v85_v35  ;;  %v89_v40 = vor.u32 8388608, %v88_v37 }
  0xb2   :  { %v91_v38 = vadd.s32 1, %v399_v36  ;;  %v129_v48 = vshll.u32 %v89_v40, 8 }
  0xb4   :  { %vm92_vm1 = vcmp.gt.s32.totalorder %v91_v38, 0 }
  0xb5   :  { %v93_v39 = vsel %vm92_vm1, %v91_v38, 0 }
  0xb6   :  { %v95_v41 = vand.u32 31, %v93_v39  ;;  %v94_v42 = vshrl.u32 %v93_v39, 5 }
  0xb8   :  { %v96_v43 = vsub.s32 32, %v95_v41  ;;  %v107_v45 = vshll.u32 %v666_v44, %v95_v41  ;;  %v110_v47 = vshll.u32 %v667_v46, %v95_v41  ;;  %v98_v53 = vshll.u32 %v669_v52, %v95_v41 }
  0xb9   :  { %v101_v56 = vshll.u32 %v670_v54, %v95_v41  ;;  %v104_v59 = vshll.u32 %v671_v57, %v95_v41  ;;  %vm116_vm2 = vcmp.lt.s32.totalorder %v94_v42, 4  ;;  %vm113_vm3 = vcmp.lt.s32.totalorder %v94_v42, 1 }
  0xba   :  { %v108_v49 = vshrl.u32 %v667_v46, %v96_v43  ;;  %v111_v51 = vshrl.u32 %v668_v50, %v96_v43  ;;  %v99_v55 = vshrl.u32 %v670_v54, %v96_v43  ;;  %v102_v58 = vshrl.u32 %v671_v57, %v96_v43 }
  0xbb   :  { %v105_v60 = vshrl.u32 %v666_v44, %v96_v43  ;;  %v97_v0 = vshrl.u32 %v669_v52, %v96_v43  ;;  %vm114_vm4 = vcmp.lt.s32.totalorder %v94_v42, 2  ;;  %vm115_vm5 = vcmp.lt.s32.totalorder %v94_v42, 3 }
  0xbc   :  { %v109_v61 = vor.u32 %v108_v49, %v107_v45  ;;  %v112_v62 = vor.u32 %v111_v51, %v110_v47  ;;  %v100_v63 = vor.u32 %v99_v55, %v98_v53  ;;  %v103_v1 = vor.u32 %v102_v58, %v101_v56 }
  0xbd   :  { %v106_v2 = vor.u32 %v105_v60, %v104_v59 }
  0xbe   :  { %v122_v3 = vsel %vm116_vm2, %v109_v61, 920167782  ;;  %v126_v4 = vsel %vm116_vm2, %v112_v62, 1326507024  ;;  %v121_v7 = vsel %vm113_vm3, %v100_v63, %v103_v1  ;;  %v117_v10 = vsel %vm113_vm3, %v97_v0, %v100_v63  ;;  %v286_v62 = vld [vmem:[#allocation6] sm:$0xff]  ;;  %v287_v63 = vld [vmem:[#allocation6 + $0x8] sm:$0xff] }
  0xbf   :  { %v118_v6 = vsel %vm116_vm2, %v106_v2, 2102212464  ;;  %v123_v8 = vsel %vm115_vm5, %v106_v2, %v122_v3  ;;  %v125_v9 = vsel %vm113_vm3, %v103_v1, %v106_v2  ;;  %v127_v13 = vsel %vm115_vm5, %v109_v61, %v126_v4  ;;  %v289_v2 = vld [vmem:[#allocation6 + $0x18] sm:$0xff]  ;;  %v290_v4 = vld [vmem:[#allocation6 + $0x20] sm:$0xff] }
  0xc0   :  { %v119_v11 = vsel %vm115_vm5, %v103_v1, %v118_v6  ;;  %v124_v12 = vsel %vm114_vm4, %v121_v7, %v123_v8  ;;  %v128_v14 = vsel %vm114_vm4, %v125_v9, %v127_v13  ;;  %v535_v0 = vpack.c.bf16 %v287_v63, %v286_v62  ;;  %v288_v1 = vld [vmem:[#allocation6 + $0x10] sm:$0xff]  ;;  %v291_v6 = vld [vmem:[#allocation6 + $0x28] sm:$0xff]  ;;  %v293_v8 = vld [vmem:[#allocation6 + $0x38] sm:$0xff] }
  0xc1   :  { %v761_v15 = vmul.u32.u64.low %v129_v48, %v124_v12  ;;  %v762_v16 = vmul.u32.u64.high %v129_v48, %v124_v12, %v761_v15  ;;  %v764_v17 = vmul.u32.u64.low %v129_v48, %v128_v14  ;;  %v765_v18 = vmul.u32.u64.high %v129_v48, %v128_v14, %v764_v17  ;;  %v296_v13 = vld [vmem:[#allocation6 + $0x50] sm:$0xff]  ;;  %v297_v14 = vld [vmem:[#allocation6 + $0x58] sm:$0xff] }
  0xc2   :  { %v120_v19 = vsel %vm114_vm4, %v117_v10, %v119_v11  ;;  %536 = vmatpush3.bf16.msra.mxu1 %v535_v0  ;;  %v538_v3 = vpack.c.bf16 %v289_v2, %v288_v1  ;;  %v541_v7 = vpack.c.bf16 %v291_v6, %v290_v4  ;;  %v294_v10 = vld [vmem:[#allocation6 + $0x40] sm:$0xff]  ;;  %v295_v11 = vld [vmem:[#allocation6 + $0x48] sm:$0xff] }
  0xc3   :  { %v139_v20 = vadd.s32 1, %v762_v16  ;;  %v136_v21 = vmul.u32 %v129_v48, %v120_v19  ;;  %vm138_vm6 = vc.u32 %v765_v18, %v761_v15  ;;  %v137_v35 = vadd.s32 %v761_v15, %v765_v18  ;;  %537 = vmatprep.subr.bf16.mxu1 %v663_v5  ;;  %v299_v17 = vld [vmem:[#allocation6 + $0x68] sm:$0xff]  ;;  %v300_v19 = vld [vmem:[#allocation6 + $0x70] sm:$0xff] }
  0xc4   :  { %v547_v12 = vpack.c.bf16 %v295_v11, %v294_v10  ;;  %v550_v15 = vpack.c.bf16 %v297_v14, %v296_v13 }
  0xc5   :  { %v140_v22 = vsel %vm138_vm6, %v139_v20, %v762_v16  ;;  %v298_v16 = vld [vmem:[#allocation6 + $0x60] sm:$0xff]  ;;  %v301_v20 = vld [vmem:[#allocation6 + $0x78] sm:$0xff] }
  0xc6   :  { %v141_v23 = vadd.s32 %v140_v22, %v136_v21  ;;  %539 = vmatpush3.bf16.msra.mxu1 %v538_v3  ;;  %v553_v18 = vpack.c.bf16 %v299_v17, %v298_v16  ;;  %v556_v21 = vpack.c.bf16 %v301_v20, %v300_v19  ;;  %v403_v22 = vld [vmem:[%s805_s4] ss:$0 sm:$0xff]  ;;  %s630_s4 = scalar_lea.vmem %s388_s10, 128 }
  0xc7   :  { %540 = vmatprep.subr.bf16.mxu1 %v663_v5  ;;  %p631_p2 = scmp.ne.s32.totalorder %s388_s10, %s630_s4  ;;  %p636_p4 = scmp.lt.s32.totalorder %s630_s4, %s630_s4 }
  0xc8   :  { %v142_v24 = vadd.s32 536870912, %v141_v23 }
  0xc9   :  { %p637_p5 = por %p636_p4, %p635_p3 }
  0xca   :  { %v143_v25 = vshrl.u32 %v142_v24, 30  ;;  %542 = vmatpush3.bf16.msra.mxu1 %v541_v7 }
  0xcb   :  { %543 = vmatprep.subr.bf16.mxu1 %v663_v5  ;;  %p638_p6 = pnand %p637_p5, %p631_p2 }
  0xcc   :  { %v144_v26 = vshll.u32 %v143_v25, 30  ;;  %v167_v47 = vsub.s32 4, %v143_v25 }
  0xce   :  { %v145_v27 = vsub.s32 %v141_v23, %v144_v26  ;;  %v168_v50 = vsel %vm83_vm8, %v167_v47, %v143_v25 }
  0xcf   :  { %v170_v52 = vsel %vm82_vm9, 0, %v168_v50 }
  0xd0   :  { %v147_v28 = vsub.s32 0, %v145_v27  ;;  %v174_v53 = vadd.s32 3, %v170_v52 }
  0xd2   :  { %v400_v29 = vmin.u32 %v147_v28, %v145_v27  ;;  %v175_v54 = vand.u32 3, %v174_v53 }
  0xd4   :  { %v149_v30 = vclz %v400_v29  ;;  %vm180_vm10 = vcmp.eq.s32.totalorder %v175_v54, 2  ;;  %vm177_vm11 = vcmp.eq.s32.totalorder %v175_v54, 0  ;;  %vm176_vm12 = vcmp.lt.s32.totalorder %v175_v54, 2 }
  0xd6   :  { %v401_v31 = vadd.s32 4294967294, %v149_v30 }
  0xd8   :  { %vm402_vm7 = vcmp.lt.s32.totalorder %v401_v31, 0 }
  0xd9   :  { %v152_v33 = vsel %vm402_vm7, 0, %v401_v31 }
  0xda   :  { %v153_v36 = vsub.s32 32, %v152_v33  ;;  %v157_v37 = vsub.s32 4294967266, %v152_v33  ;;  %v154_v38 = vshll.u32 %v145_v27, %v152_v33 }
  0xdc   :  { %v155_v39 = vshrl.u32 %v137_v35, %v153_v36  ;;  %v158_v40 = vadd.s32 127, %v157_v37 }
  0xde   :  { %v156_v41 = vor.u32 %v155_v39, %v154_v38  ;;  %v159_v42 = vshll.u32 %v158_v40, 23 }
  0xe0   :  { %v160_v43 = vor.u32 4788187, %v159_v42  ;;  %v163_v45 = vcvt.s32.f32 %v156_v41 }
  0xe2   :  { %v161_v44 = vand.u32 2147483647, %v160_v43 }
  0xe4   :  { %v164_v46 = vmul.f32 %v163_v45, %v161_v44 }
  0xe6   :  { %v165_v48 = vxor.u32 2147483648, %v164_v46 }
  0xe8   :  { %v166_v49 = vsel %vm83_vm8, %v165_v48, %v164_v46 }
  0xe9   :  { %v169_v51 = vsel %vm82_vm9, %v755_v32, %v166_v49  ;;  %v292_v32 = vld [vmem:[#allocation6 + $0x30] sm:$0xff] }
  0xea   :  { %578 = vcosq.f32 %v169_v51  ;;  %v544_v9 = vpack.c.bf16 %v293_v8, %v292_v32 }
  0xeb   :  { %580 = vsinq.f32 %v169_v51 }
  0xec   :  { %545 = vmatpush3.bf16.msra.mxu1 %v544_v9 }
  0xed   :  { %546 = vmatprep.subr.bf16.mxu1 %v663_v5 }
  0xf0   :  { %548 = vmatpush3.bf16.msra.mxu1 %v547_v12 }
  0xf1   :  { %549 = vmatprep.subr.bf16.mxu1 %v663_v5 }
  0xf4   :  { %v579_v55 = vpop.eup %578  ;;  %551 = vmatpush3.bf16.msra.mxu1 %v550_v15 }
  0xf5   :  { %v581_v56 = vpop.eup %580  ;;  %v181_v57 = vxor.u32 2147483648, %v579_v55  ;;  %552 = vmatprep.subr.bf16.mxu1 %v663_v5 }
  0xf6   :  { %v178_v58 = vxor.u32 2147483648, %v581_v56 }
  0xf7   :  { %v182_v59 = vsel %vm180_vm10, %v181_v57, %v581_v56 }
  0xf8   :  { %v179_v60 = vsel %vm177_vm11, %v579_v55, %v178_v58  ;;  %554 = vmatpush3.bf16.msra.mxu1 %v553_v18 }
  0xf9   :  { %v183_v34 = vsel %vm176_vm12, %v179_v60, %v182_v59  ;;  %555 = vmatprep.subr.bf16.mxu1 %v663_v5  ;;  %v405_v5 = vld [vmem:[%s807_s6] ss:$0 sm:$0xff] }
  0xfa   :  { %v184_v61 = vsel %vm173_vm13, nan, %v183_v34 }
  0xfb   :  { %473 = vmatmul.mubr.f32.vlgmr.msra.gmra.mrb[0].mxu0 %v184_v61 }
  0xfc   :  { %557 = vmatpush3.bf16.msra.mxu1 %v556_v21 }
 0x1ce   :  { %v274_v23 = vpop.f32.mrb[0].mxu0 }
 0x1cf   :  { %v275_v24 = vadd.f32 %v403_v22, %v274_v23  ;;  %v474_v25 = vpop.f32.mrb[1].mxu0 }
 0x1d1   :  { %v404_v26 = vmul.f32 -1.442695, %v275_v24 }
 0x1d3   :  { %582 = vpow2.f32 %v404_v26 }
 0x1dd   :  { %v583_v27 = vpop.eup %582 }
 0x1de   :  { %v281_v28 = vadd.f32 1.0, %v583_v27 }
 0x1e0   :  { %584 = vrcp.f32 %v281_v28 }
 0x1ea   :  { %v585_v29 = vpop.eup %584 }
 0x1eb   :  { %v284_v30 = vmul.f32 %v585_v29, %v275_v24 }
 0x1ed   :  { %508 = vmatmul.mubr.f32.vlgmr.msra.gmra.mrb[0].mxu1 %v284_v30 }
 0x2c0   :  { %v376_v31 = vpop.f32.mrb[0].mxu1 }
 0x2c1   :  { %v377_v33 = vadd.f32 %v405_v5, %v376_v31  ;;  %v509_v35 = vpop.f32.mrb[1].mxu1 }
 0x2c3   :  { %380 = vst [vmem:[#allocation8] sm:$0xff] %v377_v33 }
 0x2c4   :  { %641 = shalt.err (!%p638_p6)
}
 0x2c5   :  { %s642_s13 = scalar_lea.hbm %s808_s7, 128 }
 0x2c6   :  { %p643_p7 = scmp.ne.s32.totalorder %s808_s7, %s642_s13  ;;  %p646_p8 = scmp.lt.u32.totalorder %s642_s13, %s808_s7 }
 0x2c8   :  { %p648_p9 = pnand %p646_p8, %p643_p7 }
 0x2ca   :  { %651 = shalt.err (!%p648_p9)
}
 0x2cb   :  { %390 = dma.vmem_to_hbm [thread:$0]  %s388_s10, 128, %s808_s7, [#allocation5]  }
 0x2cc   :  { %656 = dma.done.wait [#allocation5], 128  }
 0x2cd   :  { %657 = vsyncadd [#allocation5], 4294967168 }
 0x2ce   :  { %394 = vsyncpa [#allocation4], 1 }
 0x2cf   :  { %395 = vsyncpa [#allocation7], 1 }
 0x2d0   :  { %396 = vsyncpa [#allocation5], 1 }

</bundles_post_ra>
